<compile_context>
chip_gen: v7x
topology: tpu7x:2x2x1
jax: 0.10.0
libtpu: 0.0.40
codegen_flags: <defaults>
</compile_context>

<pallas_src>
import jax
import jax.numpy as jnp
from jax.experimental import pallas as pl
from jax.experimental.pallas import tpu as pltpu


# ----------------------------------------------------------------------------
# Kernel
# ----------------------------------------------------------------------------
def dense_relu_kernel(x_ref, w_ref, b_ref, o_ref, acc_ref):
    # x_ref  : (tm, tk)  compute dtype
    # w_ref  : (tk, tn)  compute dtype (pre-transposed (K, N) layout)
    # b_ref  : (1,  tn)  f32
    # o_ref  : (tm, tn)  output dtype
    # acc_ref: (tm, tn)  f32 accumulator, persists across the K grid axis
    k = pl.program_id(2)

    prod = jnp.dot(x_ref[...], w_ref[...], preferred_element_type=jnp.float32)

    @pl.when(k == 0)
    def _first():
        acc_ref[...] = prod            # no zero-init + add on the first step

    @pl.when(k > 0)
    def _accumulate():
        acc_ref[...] += prod

    @pl.when(k == pl.num_programs(2) - 1)
    def _finalize():
        y = acc_ref[...] + b_ref[...]  # bias broadcast, f32
        o_ref[...] = jnp.maximum(y, 0.0).astype(o_ref.dtype)


# ----------------------------------------------------------------------------
# Helpers
# ----------------------------------------------------------------------------
def _round_up(x, m):
    return ((x + m - 1) // m) * m


def _tpu_generation():
    try:
        kind = jax.devices()[0].device_kind.lower()
    except Exception:
        return "unknown"
    if "v6" in kind:
        return "v6"
    if "v5" in kind:
        return "v5"
    if "7" in kind:
        return "v7"
    return "unknown"


def _vmem_cap_bytes(gen):
    """Generation-aware scoped-VMEM ceiling (leaves headroom for the compiler)."""
    cap = None
    try:
        cap = int(pltpu.get_tpu_info().vmem_capacity_bytes)
    except Exception:
        cap = None
    if cap is not None:
        # ~5/8 of physical: 40 MiB on v7x (64 MiB), 64 MiB cap on 128 MiB parts.
        return int(min(max(cap * 5 // 8, 16 << 20), 64 << 20))
    if gen in ("v5", "v6"):
        return 64 << 20
    return 40 << 20  # v7x / unknown: safe on every generation


def _default_tiles_nk(gen, compute_dtype):
    """(tn, tk) defaults per generation / compute dtype."""
    if jnp.dtype(compute_dtype).itemsize >= 4:     # f32 path
        return 512, 512
    if gen == "v6":                                # needs ~650 FLOP/byte to be MXU-bound
        return 1024, 1024
    return 512, 1024                               # v5e / v7x / unknown


def _default_tm(gen, compute_dtype):
    if gen == "v6" and jnp.dtype(compute_dtype).itemsize < 4:
        return 1024
    return 512


# ----------------------------------------------------------------------------
# One-time parameter preparation (pad + transpose + cast the static weight)
# ----------------------------------------------------------------------------
def prepare_dense_params(weight, bias, *, compute_dtype=jnp.bfloat16,
                         tn=None, tk=None):
    """weight: (out_features, in_features) PyTorch layout; bias: (out_features,).

    Returns a dict holding the (Kp, Np) pre-transposed / pre-padded / pre-cast
    weight and (1, Np) f32 bias, plus the tile sizes they were padded for.
    Do this once per layer, not per call.
    """
    N, K = weight.shape
    assert bias.shape == (N,)
    cdt = compute_dtype if compute_dtype is not None else weight.dtype
    gen = _tpu_generation()

    d_tn, d_tk = _default_tiles_nk(gen, cdt)
    tn = d_tn if tn is None else tn
    tk = d_tk if tk is None else tk
    # Shrink for small layers (block == full padded dim is always legal).
    tn = min(tn, _round_up(N, 128))
    tk = min(tk, _round_up(K, 128))
    Np, Kp = _round_up(N, tn), _round_up(K, tk)

    wt = weight.astype(cdt).T                              # (K, N)
    if (Kp, Np) != (K, N):
        wt = jnp.pad(wt, ((0, Kp - K), (0, Np - N)))       # zero K-pad -> contributes 0
    bp = bias.astype(jnp.float32)
    if Np != N:
        bp = jnp.pad(bp, (0, Np - N))
    bp = bp.reshape(1, Np)

    return {"wt": wt, "b": bp, "N": N, "K": K, "tn": tn, "tk": tk,
            "compute_dtype": cdt}


# ----------------------------------------------------------------------------
# Forward
# ----------------------------------------------------------------------------
def dense_relu(x, params, *, tm=None, out_dtype=None, buffer_count=None):
    """y = relu(x @ W.T + b) using parameters from prepare_dense_params."""
    M, K = x.shape
    assert K == params["K"], "in_features mismatch"
    cdt = params["compute_dtype"]
    out_dtype = x.dtype if out_dtype is None else out_dtype
    gen = _tpu_generation()

    wt, bp = params["wt"], params["b"]
    Kp, Np = wt.shape
    N, tn, tk = params["N"], params["tn"], params["tk"]

    if tm is None:
        tm = _default_tm(gen, cdt)
    tm = min(tm, _round_up(M, 8))
    Mp = _round_up(M, tm)

    # Megacore: if M yields a single block, split N so a parallel axis has >= 2
    # blocks (halving keeps tn a multiple of 128 and a divisor of Np).
    if Mp // tm < 2:
        while Np // tn < 2 and tn >= 256 and tn % 256 == 0:
            tn //= 2

    xp = x.astype(cdt)
    if (Mp, Kp) != (M, K):
        xp = jnp.pad(xp, ((0, Mp - M), (0, Kp - K)))

    grid = (Mp // tm, Np // tn, Kp // tk)

    # VMEM budget: double-buffered streamed tiles + bias + output + f32 acc.
    cs = jnp.dtype(cdt).itemsize
    osz = jnp.dtype(out_dtype).itemsize
    nbuf = 2 if buffer_count is None else buffer_count
    vmem_bytes = (nbuf * (tm * tk + tk * tn) * cs   # x / W tile buffers
                  + 2 * tn * 4                      # bias tile
                  + 2 * tm * tn * osz               # output tile double buffer
                  + tm * tn * 4)                    # f32 accumulator scratch
    vmem_limit = int(min(max(2 * vmem_bytes, 16 << 20), _vmem_cap_bytes(gen)))
    vmem_limit = max(vmem_limit, int(vmem_bytes) + (4 << 20))

    def _stream_spec(shape, imap):
        if buffer_count is None:
            return pl.BlockSpec(shape, imap)
        return pl.BlockSpec(shape, imap, pipeline_mode=pl.Buffered(buffer_count))

    out = pl.pallas_call(
        dense_relu_kernel,
        out_shape=jax.ShapeDtypeStruct((Mp, Np), out_dtype),
        grid_spec=pltpu.PrefetchScalarGridSpec(
            num_scalar_prefetch=0,
            grid=grid,
            in_specs=[
                _stream_spec((tm, tk), lambda i, j, k: (i, k)),   # x tile
                _stream_spec((tk, tn), lambda i, j, k: (k, j)),   # W tile (K, N)
                pl.BlockSpec((1, tn), lambda i, j, k: (0, j)),    # bias tile
            ],
            out_specs=pl.BlockSpec((tm, tn), lambda i, j, k: (i, j)),
            scratch_shapes=[pltpu.VMEM((tm, tn), jnp.float32)],
        ),
        compiler_params=pltpu.CompilerParams(
            dimension_semantics=("parallel", "parallel", "arbitrary"),
            vmem_limit_bytes=vmem_limit,
        ),
    )(xp, wt, bp)

    return out[:M, :N]


def dense_relu_torch(x, weight, bias, *, compute_dtype=jnp.bfloat16, **kw):
    """Convenience: prepare + apply in one call (pays per-call weight prep)."""
    params = prepare_dense_params(weight, bias, compute_dtype=compute_dtype)
    return dense_relu(x, params, **kw)


# ----------------------------------------------------------------------------
# Init matching the PyTorch module
# ----------------------------------------------------------------------------
def init_dense_params(key, in_features, out_features):
    """Matches Dense.__init__:
       - weight: kaiming_normal_ (he_normal), std = sqrt(2 / fan_in)
       - bias  : PyTorch Linear default, U(-1/sqrt(fan_in), 1/sqrt(fan_in))."""
    kw, kb = jax.random.split(key)
    std = (2.0 / in_features) ** 0.5
    weight = std * jax.random.normal(kw, (out_features, in_features), jnp.float32)
    bound = 1.0 / (in_features ** 0.5)
    bias = jax.random.uniform(kb, (out_features,), jnp.float32, -bound, bound)
    return weight, bias


if __name__ == "__main__":
    key = jax.random.PRNGKey(0)
    k_x, k_p, k_x2 = jax.random.split(key, 3)

    # Small demo shapes consistent with the module.
    batch, in_features, out_features = 8, 32, 128
    x = jax.random.normal(k_x, (batch, in_features), jnp.float32)
    weight, bias = init_dense_params(k_p, in_features, out_features)
    y_ref = jnp.maximum(x @ weight.T + bias, 0.0)

    # 1) Default path: weight prepared once (bf16 MXU inputs, f32 accumulation).
    params_bf16 = prepare_dense_params(weight, bias)          # one-time prep
    y_bf16 = dense_relu(x, params_bf16)
    jax.block_until_ready(y_bf16)
    assert y_bf16.shape == (batch, out_features)
    assert jnp.allclose(y_bf16, y_ref, atol=5e-2, rtol=5e-2)

    # 2) Full-f32 path: tight tolerance.
    params_f32 = prepare_dense_params(weight, bias, compute_dtype=None)
    y_f32 = dense_relu(x, params_f32)
    jax.block_until_ready(y_f32)
    assert jnp.allclose(y_f32, y_ref, atol=1e-5, rtol=1e-5)

    # 3) Non-tile-aligned shapes exercise the padding / slicing path.
    M2, K2, N2 = 20, 48, 96
    x2 = jax.random.normal(k_x2, (M2, K2), jnp.float32)
    w2, b2 = init_dense_params(k_p, K2, N2)
    y2 = dense_relu_torch(x2, w2, b2, compute_dtype=None)
    jax.block_until_ready(y2)
    y2_ref = jnp.maximum(x2 @ w2.T + b2, 0.0)
    assert y2.shape == (M2, N2)
    assert jnp.allclose(y2, y2_ref, atol=1e-5, rtol=1e-5)

    print("KERNEL_OK")
</pallas_src>

<mosaic_0001>
module attributes {stable_mosaic.version = 11 : i64} {
  func.func @dense_relu_kernel(%arg0: i32, %arg1: i32, %arg2: i32, %arg3: memref<8x128xbf16, #tpu.memory_space<vmem>>, %arg4: memref<128x128xbf16, #tpu.memory_space<vmem>>, %arg5: memref<1x128xf32, #tpu.memory_space<vmem>>, %arg6: memref<8x128xf32, #tpu.memory_space<vmem>>, %arg7: memref<8x128xf32, #tpu.memory_space<vmem>>) attributes {dimension_semantics = [#tpu.dimension_semantics<parallel>, #tpu.dimension_semantics<parallel>, #tpu.dimension_semantics<arbitrary>], iteration_bounds = array<i64: 1, 1, 1>, scalar_prefetch = 0 : i64, scratch_operands = 1 : i64, tpu.core_type = #tpu.core_type<tc>, window_params = [{transform_indices = @transform_0, window_bounds = array<i64: 8, 128>}, {transform_indices = @transform_1, window_bounds = array<i64: 128, 128>}, {transform_indices = @transform_2, window_bounds = array<i64: 1, 128>}, {transform_indices = @transform_3, window_bounds = array<i64: 8, 128>}]} {
    %c0 = arith.constant 0 : index
    %c0_0 = arith.constant 0 : index
    %0 = vector.load %arg3[%c0, %c0_0] : memref<8x128xbf16, #tpu.memory_space<vmem>>, vector<8x128xbf16>
    %c0_1 = arith.constant 0 : index
    %c0_2 = arith.constant 0 : index
    %1 = vector.load %arg4[%c0_1, %c0_2] : memref<128x128xbf16, #tpu.memory_space<vmem>>, vector<128x128xbf16>
    %cst = arith.constant dense<0.000000e+00> : vector<8x128xf32>
    %2 = tpu.matmul %0, %1, %cst {dimension_numbers = #tpu.dot_dimension_numbers<[1], [0], [0], [1], [0, 0, 1, 1], [], []>} : vector<8x128xbf16>, vector<128x128xbf16>, vector<8x128xf32> -> vector<8x128xf32>
    %c0_i32 = arith.constant 0 : i32
    %3 = arith.cmpi eq, %arg2, %c0_i32 : i32
    %4 = arith.extui %3 : i1 to i32
    %c0_i32_3 = arith.constant 0 : i32
    %5 = arith.cmpi ne, %4, %c0_i32_3 : i32
    scf.if %5 {
      %c0_8 = arith.constant 0 : index
      %c0_9 = arith.constant 0 : index
      %12 = vector.load %arg7[%c0_8, %c0_9] : memref<8x128xf32, #tpu.memory_space<vmem>>, vector<8x128xf32>
      tpu.vector_store %arg7[%c0_8, %c0_9], %2 {strides = array<i32>} : memref<8x128xf32, #tpu.memory_space<vmem>>, vector<8x128xf32>,
    } else {
    }
    %c0_i32_4 = arith.constant 0 : i32
    %6 = arith.cmpi sgt, %arg2, %c0_i32_4 : i32
    %7 = arith.extui %6 : i1 to i32
    %c0_i32_5 = arith.constant 0 : i32
    %8 = arith.cmpi ne, %7, %c0_i32_5 : i32
    scf.if %8 {
      %c0_8 = arith.constant 0 : index
      %c0_9 = arith.constant 0 : index
      %12 = vector.load %arg7[%c0_8, %c0_9] : memref<8x128xf32, #tpu.memory_space<vmem>>, vector<8x128xf32>
      %13 = arith.addf %12, %2 : vector<8x128xf32>
      %c0_10 = arith.constant 0 : index
      %c0_11 = arith.constant 0 : index
      %14 = vector.load %arg7[%c0_10, %c0_11] : memref<8x128xf32, #tpu.memory_space<vmem>>, vector<8x128xf32>
      tpu.vector_store %arg7[%c0_10, %c0_11], %13 {strides = array<i32>} : memref<8x128xf32, #tpu.memory_space<vmem>>, vector<8x128xf32>,
    } else {
    }
    %c0_i32_6 = arith.constant 0 : i32
    %9 = arith.cmpi eq, %arg2, %c0_i32_6 : i32
    %10 = arith.extui %9 : i1 to i32
    %c0_i32_7 = arith.constant 0 : i32
    %11 = arith.cmpi ne, %10, %c0_i32_7 : i32
    scf.if %11 {
      %c0_8 = arith.constant 0 : index
      %c0_9 = arith.constant 0 : index
      %12 = vector.load %arg7[%c0_8, %c0_9] : memref<8x128xf32, #tpu.memory_space<vmem>>, vector<8x128xf32>
      %c0_10 = arith.constant 0 : index
      %c0_11 = arith.constant 0 : index
      %13 = vector.load %arg5[%c0_10, %c0_11] : memref<1x128xf32, #tpu.memory_space<vmem>>, vector<1x128xf32>
      %14 = vector.broadcast %13 : vector<1x128xf32> to vector<8x128xf32>
      %15 = arith.addf %12, %14 : vector<8x128xf32>
      %cst_12 = arith.constant 0.000000e+00 : f32
      %16 = vector.broadcast %cst_12 : f32 to vector<8x128xf32>
      %17 = arith.maximumf %15, %16 : vector<8x128xf32>
      %c0_13 = arith.constant 0 : index
      %c0_14 = arith.constant 0 : index
      %18 = vector.load %arg6[%c0_13, %c0_14] : memref<8x128xf32, #tpu.memory_space<vmem>>, vector<8x128xf32>
      tpu.vector_store %arg6[%c0_13, %c0_14], %17 {strides = array<i32>} : memref<8x128xf32, #tpu.memory_space<vmem>>, vector<8x128xf32>,
    } else {
    }
    return
  }
  func.func @transform_0(%arg0: i32, %arg1: i32, %arg2: i32) -> (i32, i32) {
    %c0_i32 = arith.constant 0 : i32
    return %arg0, %arg2 : i32, i32
  }
  func.func @transform_1(%arg0: i32, %arg1: i32, %arg2: i32) -> (i32, i32) {
    %c0_i32 = arith.constant 0 : i32
    return %arg2, %arg1 : i32, i32
  }
  func.func @transform_2(%arg0: i32, %arg1: i32, %arg2: i32) -> (i32, i32) {
    %c0_i32 = arith.constant 0 : i32
    %c0_i32_0 = arith.constant 0 : i32
    return %c0_i32, %arg1 : i32, i32
  }
  func.func @transform_3(%arg0: i32, %arg1: i32, %arg2: i32) -> (i32, i32) {
    %c0_i32 = arith.constant 0 : i32
    return %arg0, %arg1 : i32, i32
  }
}

</mosaic_0001>

<bundles_post_ra>
// kernel: tpu_custom_call.1
= control target key start
LH: loop header
LB: loop body
LE: loop exit
PB: predicated region body
PF: predicated region fallthrough
CT: control target
= control target key end

     0   :  { %8 = vsyncpa [#allocation4], 0  ;;  %s387_s0 = inlined_call_operand.hbm [shape: bf16[8,128], index: 0, kind: input, shape index: {}]   ;;  %s388_s1 = inlined_call_operand.hbm [shape: bf16[128,128], index: 1, kind: input, shape index: {}]   ;;  %s389_s2 = inlined_call_operand.vmem [shape: f32[1,128], index: 2, kind: input, shape index: {}]   ;;  %s390_s3 = inlined_call_operand.hbm [shape: f32[8,128], index: 3, kind: output, shape index: {}]  }
   0x1   :  { %9 = vsyncpa [#allocation7], 0 }
   0x2   :  { %10 = vsyncpa [#allocation5], 0  ;;  %s314_s12 = smov [#allocation3]   ;;  %s315_s14 = smov [#allocation6]  }
   0x3   :  { %s17_s13 = sshll.u32 %s314_s12, 4  ;;  %s26_s15 = sshll.u32 %s315_s14, 4  ;;  %s18_s13 = int_to_ptr.vmem [resolvable:$true] %s17_s13  ;;  %s341_s15 = int_to_ptr.vmem [resolvable:$true] %s26_s15 }
   0x4   :  { %s242_s18 = scalar_lea.hbm %s387_s0, 64 }
   0x5   :  { %p243_p0 = scmp.ne.s32.totalorder %s387_s0, %s242_s18  ;;  %p246_p1 = scmp.lt.u32.totalorder %s242_s18, %s387_s0 }
   0x7   :  { %p248_p2 = pnand %p246_p1, %p243_p0 }
   0x9   :  { %251 = shalt.err (!%p248_p2)
}
   0xa   :  { %s252_s23 = scalar_lea.vmem %s18_s13, 64  ;;  %p257_p4 = scmp.lt.s32.totalorder %s18_s13, %s18_s13 }
   0xb   :  { %p253_p3 = scmp.ne.s32.totalorder %s18_s13, %s252_s23  ;;  %p258_p5 = scmp.lt.s32.totalorder %s252_s23, %s252_s23 }
   0xd   :  { %p259_p6 = por %p258_p5, %p257_p4 }
   0xf   :  { %p260_p7 = pnand %p259_p6, %p253_p3 }
  0x11   :  { %263 = shalt.err (!%p260_p7)
}
  0x12   :  { %20 = dma.hbm_to_vmem [thread:$0]  %s387_s0, 64, %s18_s13, [#allocation4]  }
  0x13   :  { %s264_s28 = scalar_lea.hbm %s388_s1, 1024 }
  0x14   :  { %p265_p8 = scmp.ne.s32.totalorder %s388_s1, %s264_s28  ;;  %p268_p9 = scmp.lt.u32.totalorder %s264_s28, %s388_s1 }
  0x16   :  { %p270_p10 = pnand %p268_p9, %p265_p8 }
  0x18   :  { %273 = shalt.err (!%p270_p10)
}
  0x19   :  { %s274_s6 = scalar_lea.vmem %s341_s15, 1024  ;;  %p279_p12 = scmp.lt.s32.totalorder %s341_s15, %s341_s15 }
  0x1a   :  { %p275_p11 = scmp.ne.s32.totalorder %s341_s15, %s274_s6  ;;  %p280_p13 = scmp.lt.s32.totalorder %s274_s6, %s274_s6 }
  0x1c   :  { %p281_p0 = por %p280_p13, %p279_p12 }
  0x1e   :  { %p282_p1 = pnand %p281_p0, %p275_p11 }
  0x20   :  { %285 = shalt.err (!%p282_p1)
}
  0x21   :  { %s316_s0 = smov 64   ;;  %s317_s7 = smov 4  }
  0x22   :  { %32 = dma.hbm_to_vmem [thread:$0]  %s388_s1, 1024, %s341_s15, [#allocation7], %s316_s0, %s316_s0, %s317_s7  }
  0x23   :  { %308 = dma.done.wait [#allocation4], 64  }
  0x24   :  { %309 = vsyncadd [#allocation4], 4294967232 }
  0x25   :  { %310 = dma.done.wait [#allocation7], 1024  }
  0x26   :  { %311 = vsyncadd [#allocation7], 4294966272  ;;  %v318_v0 = vmov 0.0   ;;  %vm319_vm0 = vmmov 0   ;;  %v234_v1 = vld [vmem:[#allocation6] sm:$0xff]   ;;  %v235_v2 = vld [vmem:[#allocation6 + $0x8] sm:$0xff]  }
  0x27   :  { %207 = vmatprep.subr.bf16.mxu0 %v318_v0  ;;  %223 = vmatprep.mubr.msk.bf16.mxu0 %vm319_vm0, %v318_v0  ;;  %v236_v3 = vld [vmem:[#allocation6 + $0x10] sm:$0xff]   ;;  %v237_v4 = vld [vmem:[#allocation6 + $0x18] sm:$0xff]   ;;  %v238_v5 = vld [vmem:[#allocation6 + $0x20] sm:$0xff]   ;;  %s320_s11 = smov [#allocation8]  }
  0x28   :  { %208 = vmatpush3.bf16.msra.mxu0 %v234_v1  ;;  %v239_v6 = vld [vmem:[#allocation6 + $0x28] sm:$0xff]   ;;  %v240_v7 = vld [vmem:[#allocation6 + $0x30] sm:$0xff]   ;;  %v241_v8 = vld [vmem:[#allocation6 + $0x38] sm:$0xff]   ;;  %s179_s12 = sshll.u32 %s320_s11, 4  ;;  %s180_s12 = int_to_ptr.vmem [resolvable:$true] %s179_s12 }
  0x29   :  { %209 = vmatprep.subr.bf16.mxu0 %v318_v0  ;;  %v42_v9 = vld [vmem:[#allocation3] sm:$0xf]  ;;  %s286_s13 = scalar_lea.vmem %s180_s12, 128  ;;  %p291_p3 = scmp.lt.s32.totalorder %s180_s12, %s180_s12 }
  0x2a   :  { %v197_v10 = vld [vmem:[%s389_s2] ss:$0 sm:$0xff]  ;;  %p287_p2 = scmp.ne.s32.totalorder %s180_s12, %s286_s13  ;;  %p292_p4 = scmp.lt.s32.totalorder %s286_s13, %s286_s13 }
  0x2c   :  { %210 = vmatpush3.bf16.msra.mxu0 %v235_v2  ;;  %p293_p5 = por %p292_p4, %p291_p3 }
  0x2d   :  { %211 = vmatprep.subr.bf16.mxu0 %v318_v0 }
  0x2e   :  { %p294_p6 = pnand %p293_p5, %p287_p2 }
  0x30   :  { %212 = vmatpush3.bf16.msra.mxu0 %v236_v3 }
  0x31   :  { %213 = vmatprep.subr.bf16.mxu0 %v318_v0 }
  0x34   :  { %214 = vmatpush3.bf16.msra.mxu0 %v237_v4 }
  0x35   :  { %215 = vmatprep.subr.bf16.mxu0 %v318_v0 }
  0x38   :  { %216 = vmatpush3.bf16.msra.mxu0 %v238_v5 }
  0x39   :  { %217 = vmatprep.subr.bf16.mxu0 %v318_v0 }
  0x3c   :  { %218 = vmatpush3.bf16.msra.mxu0 %v239_v6 }
  0x3d   :  { %219 = vmatprep.subr.bf16.mxu0 %v318_v0 }
  0x40   :  { %220 = vmatpush3.bf16.msra.mxu0 %v240_v7 }
  0x41   :  { %221 = vmatprep.subr.bf16.mxu0 %v318_v0 }
  0x44   :  { %222 = vmatpush3.bf16.msra.mxu0 %v241_v8 }
  0x47   :  { %224 = vmatmul.mubr.bf16.vlgmr.msra.gmra.mrb[0].mxu0 %v42_v9 }
 0x11a   :  { %v141_v11 = vpop.f32.mrb[0].mxu0 }
 0x11b   :  { %v170_v12 = vadd.f32 %v197_v10, %v141_v11  ;;  %v225_v13 = vpop.f32.mrb[1].mxu0 }
 0x11c   :  { %v144_v14 = vpop.f32.mrb[2].mxu0 }
 0x11d   :  { %v171_v15 = vmax.f32 %v170_v12, 0.0  ;;  %v226_v16 = vpop.f32.mrb[3].mxu0 }
 0x11f   :  { %172 = vst [vmem:[#allocation8] sm:$0xff] %v171_v15 }
 0x120   :  { %297 = shalt.err (!%p294_p6)
}
 0x121   :  { %s298_s2 = scalar_lea.hbm %s390_s3, 128 }
 0x122   :  { %p299_p7 = scmp.ne.s32.totalorder %s390_s3, %s298_s2  ;;  %p302_p8 = scmp.lt.u32.totalorder %s298_s2, %s390_s3 }
 0x124   :  { %p304_p9 = pnand %p302_p8, %p299_p7 }
 0x126   :  { %307 = shalt.err (!%p304_p9)
}
 0x127   :  { %182 = dma.vmem_to_hbm [thread:$0]  %s180_s12, 128, %s390_s3, [#allocation5]  }
 0x128   :  { %312 = dma.done.wait [#allocation5], 128  }
 0x129   :  { %313 = vsyncadd [#allocation5], 4294967168 }
 0x12a   :  { %186 = vsyncpa [#allocation4], 1 }
 0x12b   :  { %187 = vsyncpa [#allocation7], 1 }
 0x12c   :  { %188 = vsyncpa [#allocation5], 1 }

</bundles_post_ra>
